<compile_context>
chip_gen: v7x
topology: tpu7x:2x2x1
jax: 0.10.0
libtpu: 0.0.40
codegen_flags: <defaults>
</compile_context>

<pallas_src>
from functools import partial
from math import sqrt

import jax
import jax.numpy as jnp
from jax.experimental import pallas as pl
from jax.experimental.pallas import tpu as pltpu

# Model hyper-parameters (small, consistent with the module signature).
N_HEADS = 4
DK = 8
DV = 8
DMODEL = 32
FF_INNER = 64
_LANE = 128

# Row offsets inside the packed weight slab (all 8-aligned).
_R_QKV = 0                        # rows [  0,  32): Wq|Wk|Wv head-major, lanes 0:96
_R_WO = _R_QKV + DMODEL           # rows [ 32,  64): Wo,  lanes 0:32
_R_W1 = _R_WO + DMODEL            # rows [ 64,  96): W1,  lanes 0:64
_R_W2 = _R_W1 + DMODEL            # rows [ 96, 160): W2,  lanes 0:32
_R_BIAS = _R_W2 + FF_INNER        # row   160      : b1 lanes 0:64, b2 lanes 64:96
_SLAB_ROWS = 168                  # 161 rounded up to a multiple of 8


def _encoder_kernel(x_ref, w_ref, out_ref, *, seq_len):
    """Fused EncoderStack forward for ONE batch element.

    x_ref:   (1, T, D)          current batch's activations
    w_ref:   (_SLAB_ROWS, 128)  packed weight slab (see row offsets above)
    out_ref: (1, T, D)
    """
    T = seq_len
    x = x_ref[0]                                                      # (T, D)

    # ---- fused QKV projection for all heads: one lane-dense matmul ----
    qkv = jnp.dot(x, w_ref[_R_QKV:_R_QKV + DMODEL, :],
                  preferred_element_type=jnp.float32)                 # (T, 128)
    q_off, k_off, v_off = 0, N_HEADS * DK, 2 * N_HEADS * DK
    scale = 1.0 / sqrt(DK)

    scores, values = [], []
    for h in range(N_HEADS):                                          # static unroll (4)
        q_h = qkv[:, q_off + h * DK: q_off + (h + 1) * DK]            # (T, dk)
        k_h = qkv[:, k_off + h * DK: k_off + (h + 1) * DK]            # (T, dk)
        v_h = qkv[:, v_off + h * DV: v_off + (h + 1) * DV]            # (T, dv)
        s_h = scale * jax.lax.dot_general(                            # Q @ K^T -> (T, T)
            q_h, k_h, (((1,), (1,)), ((), ())),
            preferred_element_type=jnp.float32)
        scores.append(s_h)
        values.append(v_h)

    # Softmax across the HEAD axis (reproducing F.softmax's default dim=1 on a 4-D
    # tensor): elementwise max / exp / sum over the H per-head (T, T) score maps.
    m = scores[0]
    for h in range(1, N_HEADS):
        m = jnp.maximum(m, scores[h])
    exps = [jnp.exp(s - m) for s in scores]
    denom = exps[0]
    for h in range(1, N_HEADS):
        denom = denom + exps[h]
    inv = 1.0 / denom        # exact divide: preserves 1e-4 parity with the reference

    # Per-head attention: (T, T) @ (T, dv)
    att = [jnp.dot(exps[h] * inv, values[h], preferred_element_type=jnp.float32)
           for h in range(N_HEADS)]                                   # H x (T, dv)

    # torch's flat reshape (H, T, dv) -> (T, H*dv), built entirely in registers:
    # output row t2, lane chunk g comes from head (t2*H+g)//T, timestep (t2*H+g)%T.
    # (Static single-row slices + concat only; no VMEM scratch round-trip.)
    col_blocks = []
    for g in range(N_HEADS):
        rows = []
        for t2 in range(T):
            flat = t2 * N_HEADS + g
            h_idx, t_idx = flat // T, flat % T
            rows.append(att[h_idx][t_idx:t_idx + 1, :])                # (1, dv)
        col_blocks.append(jnp.concatenate(rows, axis=0))               # (T, dv)
    a_mat = jnp.concatenate(col_blocks, axis=1)                        # (T, H*dv)

    # Output projection + FeedForward (Linear -> ReLU -> Linear), all from the slab.
    wo = w_ref[_R_WO:_R_WO + N_HEADS * DV, 0:DMODEL]                   # (H*dv, D)
    w1 = w_ref[_R_W1:_R_W1 + DMODEL, 0:FF_INNER]                       # (D, F)
    w2 = w_ref[_R_W2:_R_W2 + FF_INNER, 0:DMODEL]                       # (F, D)
    b1 = w_ref[_R_BIAS:_R_BIAS + 1, 0:FF_INNER]                        # (1, F)
    b2 = w_ref[_R_BIAS:_R_BIAS + 1, FF_INNER:FF_INNER + DMODEL]        # (1, D)

    proj = jnp.dot(a_mat, wo, preferred_element_type=jnp.float32)      # (T, D)
    hidden = jnp.dot(proj, w1, preferred_element_type=jnp.float32) + b1
    hidden = jnp.maximum(hidden, 0.0)
    out_ref[0] = jnp.dot(hidden, w2, preferred_element_type=jnp.float32) + b2


def encoder_stack_forward(x, params):
    """Pallas implementation of EncoderStack.forward.  x: (B, T, Dmodel) float32."""
    B, T, D = x.shape
    f32 = jnp.float32

    # ---- one-time layout plumbing (plain JAX, outside the kernel) ----
    def pad_lanes(w):
        return jnp.pad(w, ((0, 0), (0, _LANE - w.shape[1])))

    # Head-major (D, H*dk)/(D, H*dv) slabs for the fused QKV matmul.
    wq2 = jnp.transpose(params["wq"], (1, 0, 2)).reshape(D, N_HEADS * DK)
    wk2 = jnp.transpose(params["wk"], (1, 0, 2)).reshape(D, N_HEADS * DK)
    wv2 = jnp.transpose(params["wv"], (1, 0, 2)).reshape(D, N_HEADS * DV)
    wqkv = pad_lanes(jnp.concatenate([wq2, wk2, wv2], axis=1))          # (32, 128)
    bias = pad_lanes(jnp.concatenate([params["b1"], params["b2"]], axis=1))  # (1, 128)

    # Single packed weight slab -> exactly one weight DMA stream.
    slab = jnp.concatenate(
        [wqkv,                                    # rows [  0,  32)
         pad_lanes(params["wo"]),                 # rows [ 32,  64)
         pad_lanes(params["w1"]),                 # rows [ 64,  96)
         pad_lanes(params["w2"]),                 # rows [ 96, 160)
         bias,                                    # row   160
         jnp.zeros((_SLAB_ROWS - _R_BIAS - 1, _LANE), f32)],
        axis=0).astype(f32)                       # (168, 128)

    return pl.pallas_call(
        partial(_encoder_kernel, seq_len=T),
        out_shape=jax.ShapeDtypeStruct((B, T, D), f32),
        grid=(B,),
        in_specs=[
            pl.BlockSpec((1, T, D), lambda b: (b, 0, 0)),              # one batch per step
            pl.BlockSpec((_SLAB_ROWS, _LANE), lambda b: (0, 0)),       # weights: copied once
        ],
        out_specs=pl.BlockSpec((1, T, D), lambda b: (b, 0, 0)),
        compiler_params=pltpu.CompilerParams(
            dimension_semantics=("parallel",)),                        # v7x: 2nd TC takes half the batches
    )(x, slab)


def init_params(key):
    """Deterministic parameter init mirroring the PyTorch module shapes."""
    ks = jax.random.split(key, 8)
    # MultiHeadAttention weights: torch.Tensor(...).uniform_(-1, 1)
    wq = jax.random.uniform(ks[0], (N_HEADS, DMODEL, DK), jnp.float32, -1.0, 1.0)
    wk = jax.random.uniform(ks[1], (N_HEADS, DMODEL, DK), jnp.float32, -1.0, 1.0)
    wv = jax.random.uniform(ks[2], (N_HEADS, DMODEL, DV), jnp.float32, -1.0, 1.0)
    wo = jax.random.uniform(ks[3], (N_HEADS * DV, DMODEL), jnp.float32, -1.0, 1.0)
    # FeedForward Linear layers: PyTorch-style U(-1/sqrt(fan_in), 1/sqrt(fan_in)),
    # stored pre-transposed as (in, out).
    b_in = 1.0 / sqrt(DMODEL)
    w1 = jax.random.uniform(ks[4], (DMODEL, FF_INNER), jnp.float32, -b_in, b_in)
    b1 = jax.random.uniform(ks[5], (1, FF_INNER), jnp.float32, -b_in, b_in)
    b_out = 1.0 / sqrt(FF_INNER)
    w2 = jax.random.uniform(ks[6], (FF_INNER, DMODEL), jnp.float32, -b_out, b_out)
    b2 = jax.random.uniform(ks[7], (1, DMODEL), jnp.float32, -b_out, b_out)
    return dict(wq=wq, wk=wk, wv=wv, wo=wo, w1=w1, b1=b1, w2=w2, b2=b2)


def reference_forward(x, p):
    """Pure-JAX reference reproducing the PyTorch forward exactly."""
    B, T, D = x.shape
    q = x[:, None]                                            # (B, 1, T, D)
    qp = jnp.matmul(q, p["wq"])                               # (B, H, T, dk)
    kp = jnp.matmul(q, p["wk"])                               # (B, H, T, dk)
    vp = jnp.matmul(q, p["wv"])                               # (B, H, T, dv)
    scores = (1.0 / sqrt(DK)) * jnp.matmul(qp, jnp.swapaxes(kp, 2, 3))  # (B,H,T,T)
    probs = jax.nn.softmax(scores, axis=1)                    # F.softmax default dim=1
    att = jnp.matmul(probs, vp)                               # (B, H, T, dv)
    att = att.reshape(B, T, N_HEADS * DV)                     # flat reshape (as torch)
    proj = jnp.matmul(att, p["wo"])                           # (B, T, D)
    h = jax.nn.relu(jnp.matmul(proj, p["w1"]) + p["b1"][0])
    return jnp.matmul(h, p["w2"]) + p["b2"][0]


if __name__ == "__main__":
    B, T = 2, 8
    key = jax.random.PRNGKey(0)
    k_x, k_p = jax.random.split(key)
    x = jax.random.normal(k_x, (B, T, DMODEL), dtype=jnp.float32)
    params = init_params(k_p)

    out = jax.block_until_ready(jax.jit(encoder_stack_forward)(x, params))
    ref = jax.block_until_ready(reference_forward(x, params))

    assert out.shape == (B, T, DMODEL)
    assert jnp.allclose(out, ref, rtol=1e-4, atol=1e-4), "Pallas output mismatch vs reference"

    print("KERNEL_OK")
</pallas_src>

<mosaic_0001>
module attributes {stable_mosaic.version = 11 : i64} {
  func.func @_encoder_kernel(%arg0: i32, %arg1: memref<1x8x32xf32, #tpu.memory_space<vmem>>, %arg2: memref<168x128xf32, #tpu.memory_space<vmem>>, %arg3: memref<1x8x32xf32, #tpu.memory_space<vmem>>) attributes {dimension_semantics = [#tpu.dimension_semantics<parallel>], iteration_bounds = array<i64: 2>, scalar_prefetch = 0 : i64, scratch_operands = 0 : i64, tpu.core_type = #tpu.core_type<tc>, window_params = [{transform_indices = @transform_0, window_bounds = array<i64: 1, 8, 32>}, {pipeline_mode = #tpu.pipeline_mode<synchronous>, transform_indices = @transform_1, window_bounds = array<i64: 168, 128>}, {transform_indices = @transform_2, window_bounds = array<i64: 1, 8, 32>}]} {
    %c0 = arith.constant 0 : index
    %c0_0 = arith.constant 0 : index
    %c0_1 = arith.constant 0 : index
    %0 = vector.load %arg1[%c0, %c0_0, %c0_1] : memref<1x8x32xf32, #tpu.memory_space<vmem>>, vector<1x8x32xf32>
    %1 = vector.shape_cast %0 : vector<1x8x32xf32> to vector<8x32xf32>
    %c0_2 = arith.constant 0 : index
    %c0_3 = arith.constant 0 : index
    %2 = vector.load %arg2[%c0_2, %c0_3] : memref<168x128xf32, #tpu.memory_space<vmem>>, vector<32x128xf32>
    %cst = arith.constant dense<0.000000e+00> : vector<8x128xf32>
    %3 = tpu.matmul %1, %2, %cst {dimension_numbers = #tpu.dot_dimension_numbers<[1], [0], [0], [1], [0, 0, 1, 1], [], []>} : vector<8x32xf32>, vector<32x128xf32>, vector<8x128xf32> -> vector<8x128xf32>
    %4 = vector.extract_strided_slice %3 {offsets = [0, 0], sizes = [8, 8], strides = [1, 1]} : vector<8x128xf32> to vector<8x8xf32>
    %5 = vector.extract_strided_slice %3 {offsets = [0, 32], sizes = [8, 8], strides = [1, 1]} : vector<8x128xf32> to vector<8x8xf32>
    %6 = vector.extract_strided_slice %3 {offsets = [0, 64], sizes = [8, 8], strides = [1, 1]} : vector<8x128xf32> to vector<8x8xf32>
    %cst_4 = arith.constant dense<0.000000e+00> : vector<8x8xf32>
    %7 = tpu.matmul %4, %5, %cst_4 {dimension_numbers = #tpu.dot_dimension_numbers<[1], [1], [0], [0], [0, 0, 1, 0], [], []>} : vector<8x8xf32>, vector<8x8xf32>, vector<8x8xf32> -> vector<8x8xf32>
    %cst_5 = arith.constant 0.353553385 : f32
    %8 = vector.broadcast %cst_5 : f32 to vector<8x8xf32>
    %9 = arith.mulf %8, %7 : vector<8x8xf32>
    %10 = vector.extract_strided_slice %3 {offsets = [0, 8], sizes = [8, 8], strides = [1, 1]} : vector<8x128xf32> to vector<8x8xf32>
    %11 = vector.extract_strided_slice %3 {offsets = [0, 40], sizes = [8, 8], strides = [1, 1]} : vector<8x128xf32> to vector<8x8xf32>
    %12 = vector.extract_strided_slice %3 {offsets = [0, 72], sizes = [8, 8], strides = [1, 1]} : vector<8x128xf32> to vector<8x8xf32>
    %cst_6 = arith.constant dense<0.000000e+00> : vector<8x8xf32>
    %13 = tpu.matmul %10, %11, %cst_6 {dimension_numbers = #tpu.dot_dimension_numbers<[1], [1], [0], [0], [0, 0, 1, 0], [], []>} : vector<8x8xf32>, vector<8x8xf32>, vector<8x8xf32> -> vector<8x8xf32>
    %cst_7 = arith.constant 0.353553385 : f32
    %14 = vector.broadcast %cst_7 : f32 to vector<8x8xf32>
    %15 = arith.mulf %14, %13 : vector<8x8xf32>
    %16 = vector.extract_strided_slice %3 {offsets = [0, 16], sizes = [8, 8], strides = [1, 1]} : vector<8x128xf32> to vector<8x8xf32>
    %17 = vector.extract_strided_slice %3 {offsets = [0, 48], sizes = [8, 8], strides = [1, 1]} : vector<8x128xf32> to vector<8x8xf32>
    %18 = vector.extract_strided_slice %3 {offsets = [0, 80], sizes = [8, 8], strides = [1, 1]} : vector<8x128xf32> to vector<8x8xf32>
    %cst_8 = arith.constant dense<0.000000e+00> : vector<8x8xf32>
    %19 = tpu.matmul %16, %17, %cst_8 {dimension_numbers = #tpu.dot_dimension_numbers<[1], [1], [0], [0], [0, 0, 1, 0], [], []>} : vector<8x8xf32>, vector<8x8xf32>, vector<8x8xf32> -> vector<8x8xf32>
    %cst_9 = arith.constant 0.353553385 : f32
    %20 = vector.broadcast %cst_9 : f32 to vector<8x8xf32>
    %21 = arith.mulf %20, %19 : vector<8x8xf32>
    %22 = vector.extract_strided_slice %3 {offsets = [0, 24], sizes = [8, 8], strides = [1, 1]} : vector<8x128xf32> to vector<8x8xf32>
    %23 = vector.extract_strided_slice %3 {offsets = [0, 56], sizes = [8, 8], strides = [1, 1]} : vector<8x128xf32> to vector<8x8xf32>
    %24 = vector.extract_strided_slice %3 {offsets = [0, 88], sizes = [8, 8], strides = [1, 1]} : vector<8x128xf32> to vector<8x8xf32>
    %cst_10 = arith.constant dense<0.000000e+00> : vector<8x8xf32>
    %25 = tpu.matmul %22, %23, %cst_10 {dimension_numbers = #tpu.dot_dimension_numbers<[1], [1], [0], [0], [0, 0, 1, 0], [], []>} : vector<8x8xf32>, vector<8x8xf32>, vector<8x8xf32> -> vector<8x8xf32>
    %cst_11 = arith.constant 0.353553385 : f32
    %26 = vector.broadcast %cst_11 : f32 to vector<8x8xf32>
    %27 = arith.mulf %26, %25 : vector<8x8xf32>
    %28 = arith.maximumf %9, %15 : vector<8x8xf32>
    %29 = arith.maximumf %28, %21 : vector<8x8xf32>
    %30 = arith.maximumf %29, %27 : vector<8x8xf32>
    %31 = arith.subf %9, %30 : vector<8x8xf32>
    %32 = math.exp %31 : vector<8x8xf32>
    %33 = arith.subf %15, %30 : vector<8x8xf32>
    %34 = math.exp %33 : vector<8x8xf32>
    %35 = arith.subf %21, %30 : vector<8x8xf32>
    %36 = math.exp %35 : vector<8x8xf32>
    %37 = arith.subf %27, %30 : vector<8x8xf32>
    %38 = math.exp %37 : vector<8x8xf32>
    %39 = arith.addf %32, %34 : vector<8x8xf32>
    %40 = arith.addf %39, %36 : vector<8x8xf32>
    %41 = arith.addf %40, %38 : vector<8x8xf32>
    %cst_12 = arith.constant 1.000000e+00 : f32
    %42 = vector.broadcast %cst_12 : f32 to vector<8x8xf32>
    %43 = arith.divf %42, %41 : vector<8x8xf32>
    %44 = arith.mulf %32, %43 : vector<8x8xf32>
    %cst_13 = arith.constant dense<0.000000e+00> : vector<8x8xf32>
    %45 = tpu.matmul %44, %6, %cst_13 {dimension_numbers = #tpu.dot_dimension_numbers<[1], [0], [0], [1], [0, 0, 1, 1], [], []>} : vector<8x8xf32>, vector<8x8xf32>, vector<8x8xf32> -> vector<8x8xf32>
    %46 = arith.mulf %34, %43 : vector<8x8xf32>
    %cst_14 = arith.constant dense<0.000000e+00> : vector<8x8xf32>
    %47 = tpu.matmul %46, %12, %cst_14 {dimension_numbers = #tpu.dot_dimension_numbers<[1], [0], [0], [1], [0, 0, 1, 1], [], []>} : vector<8x8xf32>, vector<8x8xf32>, vector<8x8xf32> -> vector<8x8xf32>
    %48 = arith.mulf %36, %43 : vector<8x8xf32>
    %cst_15 = arith.constant dense<0.000000e+00> : vector<8x8xf32>
    %49 = tpu.matmul %48, %18, %cst_15 {dimension_numbers = #tpu.dot_dimension_numbers<[1], [0], [0], [1], [0, 0, 1, 1], [], []>} : vector<8x8xf32>, vector<8x8xf32>, vector<8x8xf32> -> vector<8x8xf32>
    %50 = arith.mulf %38, %43 : vector<8x8xf32>
    %cst_16 = arith.constant dense<0.000000e+00> : vector<8x8xf32>
    %51 = tpu.matmul %50, %24, %cst_16 {dimension_numbers = #tpu.dot_dimension_numbers<[1], [0], [0], [1], [0, 0, 1, 1], [], []>} : vector<8x8xf32>, vector<8x8xf32>, vector<8x8xf32> -> vector<8x8xf32>
    %52 = vector.extract_strided_slice %45 {offsets = [0, 0], sizes = [1, 8], strides = [1, 1]} : vector<8x8xf32> to vector<1x8xf32>
    %53 = vector.extract_strided_slice %45 {offsets = [4, 0], sizes = [1, 8], strides = [1, 1]} : vector<8x8xf32> to vector<1x8xf32>
    %54 = vector.extract_strided_slice %47 {offsets = [0, 0], sizes = [1, 8], strides = [1, 1]} : vector<8x8xf32> to vector<1x8xf32>
    %55 = vector.extract_strided_slice %47 {offsets = [4, 0], sizes = [1, 8], strides = [1, 1]} : vector<8x8xf32> to vector<1x8xf32>
    %56 = vector.extract_strided_slice %49 {offsets = [0, 0], sizes = [1, 8], strides = [1, 1]} : vector<8x8xf32> to vector<1x8xf32>
    %57 = vector.extract_strided_slice %49 {offsets = [4, 0], sizes = [1, 8], strides = [1, 1]} : vector<8x8xf32> to vector<1x8xf32>
    %58 = vector.extract_strided_slice %51 {offsets = [0, 0], sizes = [1, 8], strides = [1, 1]} : vector<8x8xf32> to vector<1x8xf32>
    %59 = vector.extract_strided_slice %51 {offsets = [4, 0], sizes = [1, 8], strides = [1, 1]} : vector<8x8xf32> to vector<1x8xf32>
    %60 = tpu.concatenate %52, %53, %54, %55, %56, %57, %58, %59 in 0 : vector<1x8xf32>, vector<1x8xf32>, vector<1x8xf32>, vector<1x8xf32>, vector<1x8xf32>, vector<1x8xf32>, vector<1x8xf32>, vector<1x8xf32> -> vector<8x8xf32>
    %61 = vector.extract_strided_slice %45 {offsets = [1, 0], sizes = [1, 8], strides = [1, 1]} : vector<8x8xf32> to vector<1x8xf32>
    %62 = vector.extract_strided_slice %45 {offsets = [5, 0], sizes = [1, 8], strides = [1, 1]} : vector<8x8xf32> to vector<1x8xf32>
    %63 = vector.extract_strided_slice %47 {offsets = [1, 0], sizes = [1, 8], strides = [1, 1]} : vector<8x8xf32> to vector<1x8xf32>
    %64 = vector.extract_strided_slice %47 {offsets = [5, 0], sizes = [1, 8], strides = [1, 1]} : vector<8x8xf32> to vector<1x8xf32>
    %65 = vector.extract_strided_slice %49 {offsets = [1, 0], sizes = [1, 8], strides = [1, 1]} : vector<8x8xf32> to vector<1x8xf32>
    %66 = vector.extract_strided_slice %49 {offsets = [5, 0], sizes = [1, 8], strides = [1, 1]} : vector<8x8xf32> to vector<1x8xf32>
    %67 = vector.extract_strided_slice %51 {offsets = [1, 0], sizes = [1, 8], strides = [1, 1]} : vector<8x8xf32> to vector<1x8xf32>
    %68 = vector.extract_strided_slice %51 {offsets = [5, 0], sizes = [1, 8], strides = [1, 1]} : vector<8x8xf32> to vector<1x8xf32>
    %69 = tpu.concatenate %61, %62, %63, %64, %65, %66, %67, %68 in 0 : vector<1x8xf32>, vector<1x8xf32>, vector<1x8xf32>, vector<1x8xf32>, vector<1x8xf32>, vector<1x8xf32>, vector<1x8xf32>, vector<1x8xf32> -> vector<8x8xf32>
    %70 = vector.extract_strided_slice %45 {offsets = [2, 0], sizes = [1, 8], strides = [1, 1]} : vector<8x8xf32> to vector<1x8xf32>
    %71 = vector.extract_strided_slice %45 {offsets = [6, 0], sizes = [1, 8], strides = [1, 1]} : vector<8x8xf32> to vector<1x8xf32>
    %72 = vector.extract_strided_slice %47 {offsets = [2, 0], sizes = [1, 8], strides = [1, 1]} : vector<8x8xf32> to vector<1x8xf32>
    %73 = vector.extract_strided_slice %47 {offsets = [6, 0], sizes = [1, 8], strides = [1, 1]} : vector<8x8xf32> to vector<1x8xf32>
    %74 = vector.extract_strided_slice %49 {offsets = [2, 0], sizes = [1, 8], strides = [1, 1]} : vector<8x8xf32> to vector<1x8xf32>
    %75 = vector.extract_strided_slice %49 {offsets = [6, 0], sizes = [1, 8], strides = [1, 1]} : vector<8x8xf32> to vector<1x8xf32>
    %76 = vector.extract_strided_slice %51 {offsets = [2, 0], sizes = [1, 8], strides = [1, 1]} : vector<8x8xf32> to vector<1x8xf32>
    %77 = vector.extract_strided_slice %51 {offsets = [6, 0], sizes = [1, 8], strides = [1, 1]} : vector<8x8xf32> to vector<1x8xf32>
    %78 = tpu.concatenate %70, %71, %72, %73, %74, %75, %76, %77 in 0 : vector<1x8xf32>, vector<1x8xf32>, vector<1x8xf32>, vector<1x8xf32>, vector<1x8xf32>, vector<1x8xf32>, vector<1x8xf32>, vector<1x8xf32> -> vector<8x8xf32>
    %79 = vector.extract_strided_slice %45 {offsets = [3, 0], sizes = [1, 8], strides = [1, 1]} : vector<8x8xf32> to vector<1x8xf32>
    %80 = vector.extract_strided_slice %45 {offsets = [7, 0], sizes = [1, 8], strides = [1, 1]} : vector<8x8xf32> to vector<1x8xf32>
    %81 = vector.extract_strided_slice %47 {offsets = [3, 0], sizes = [1, 8], strides = [1, 1]} : vector<8x8xf32> to vector<1x8xf32>
    %82 = vector.extract_strided_slice %47 {offsets = [7, 0], sizes = [1, 8], strides = [1, 1]} : vector<8x8xf32> to vector<1x8xf32>
    %83 = vector.extract_strided_slice %49 {offsets = [3, 0], sizes = [1, 8], strides = [1, 1]} : vector<8x8xf32> to vector<1x8xf32>
    %84 = vector.extract_strided_slice %49 {offsets = [7, 0], sizes = [1, 8], strides = [1, 1]} : vector<8x8xf32> to vector<1x8xf32>
    %85 = vector.extract_strided_slice %51 {offsets = [3, 0], sizes = [1, 8], strides = [1, 1]} : vector<8x8xf32> to vector<1x8xf32>
    %86 = vector.extract_strided_slice %51 {offsets = [7, 0], sizes = [1, 8], strides = [1, 1]} : vector<8x8xf32> to vector<1x8xf32>
    %87 = tpu.concatenate %79, %80, %81, %82, %83, %84, %85, %86 in 0 : vector<1x8xf32>, vector<1x8xf32>, vector<1x8xf32>, vector<1x8xf32>, vector<1x8xf32>, vector<1x8xf32>, vector<1x8xf32>, vector<1x8xf32> -> vector<8x8xf32>
    %88 = tpu.concatenate %60, %69, %78, %87 in 1 : vector<8x8xf32>, vector<8x8xf32>, vector<8x8xf32>, vector<8x8xf32> -> vector<8x32xf32>
    %c32 = arith.constant 32 : index
    %c0_17 = arith.constant 0 : index
    %89 = vector.load %arg2[%c32, %c0_17] : memref<168x128xf32, #tpu.memory_space<vmem>>, vector<32x32xf32>
    %c64 = arith.constant 64 : index
    %c0_18 = arith.constant 0 : index
    %90 = vector.load %arg2[%c64, %c0_18] : memref<168x128xf32, #tpu.memory_space<vmem>>, vector<32x64xf32>
    %c96 = arith.constant 96 : index
    %c0_19 = arith.constant 0 : index
    %91 = vector.load %arg2[%c96, %c0_19] : memref<168x128xf32, #tpu.memory_space<vmem>>, vector<64x32xf32>
    %c160 = arith.constant 160 : index
    %c0_20 = arith.constant 0 : index
    %92 = vector.load %arg2[%c160, %c0_20] : memref<168x128xf32, #tpu.memory_space<vmem>>, vector<1x64xf32>
    %c160_21 = arith.constant 160 : index
    %c64_22 = arith.constant 64 : index
    %93 = vector.load %arg2[%c160_21, %c64_22] : memref<168x128xf32, #tpu.memory_space<vmem>>, vector<1x32xf32>
    %cst_23 = arith.constant dense<0.000000e+00> : vector<8x32xf32>
    %94 = tpu.matmul %88, %89, %cst_23 {dimension_numbers = #tpu.dot_dimension_numbers<[1], [0], [0], [1], [0, 0, 1, 1], [], []>} : vector<8x32xf32>, vector<32x32xf32>, vector<8x32xf32> -> vector<8x32xf32>
    %cst_24 = arith.constant dense<0.000000e+00> : vector<8x64xf32>
    %95 = tpu.matmul %94, %90, %cst_24 {dimension_numbers = #tpu.dot_dimension_numbers<[1], [0], [0], [1], [0, 0, 1, 1], [], []>} : vector<8x32xf32>, vector<32x64xf32>, vector<8x64xf32> -> vector<8x64xf32>
    %96 = vector.broadcast %92 : vector<1x64xf32> to vector<8x64xf32>
    %97 = arith.addf %95, %96 : vector<8x64xf32>
    %cst_25 = arith.constant 0.000000e+00 : f32
    %98 = vector.broadcast %cst_25 : f32 to vector<8x64xf32>
    %99 = arith.maximumf %97, %98 : vector<8x64xf32>
    %cst_26 = arith.constant dense<0.000000e+00> : vector<8x32xf32>
    %100 = tpu.matmul %99, %91, %cst_26 {dimension_numbers = #tpu.dot_dimension_numbers<[1], [0], [0], [1], [0, 0, 1, 1], [], []>} : vector<8x64xf32>, vector<64x32xf32>, vector<8x32xf32> -> vector<8x32xf32>
    %101 = vector.broadcast %93 : vector<1x32xf32> to vector<8x32xf32>
    %102 = arith.addf %100, %101 : vector<8x32xf32>
    %c0_27 = arith.constant 0 : index
    %c0_28 = arith.constant 0 : index
    %c0_29 = arith.constant 0 : index
    %103 = vector.load %arg3[%c0_27, %c0_28, %c0_29] : memref<1x8x32xf32, #tpu.memory_space<vmem>>, vector<1x8x32xf32>
    %104 = vector.shape_cast %103 : vector<1x8x32xf32> to vector<8x32xf32>
    %105 = vector.shape_cast %102 : vector<8x32xf32> to vector<1x8x32xf32>
    tpu.vector_store %arg3[%c0_27, %c0_28, %c0_29], %105 {strides = array<i32>} : memref<1x8x32xf32, #tpu.memory_space<vmem>>, vector<1x8x32xf32>,
    return
  }
  func.func @transform_0(%arg0: i32) -> (i32, i32, i32) {
    %c0_i32 = arith.constant 0 : i32
    %c0_i32_0 = arith.constant 0 : i32
    %c0_i32_1 = arith.constant 0 : i32
    return %arg0, %c0_i32, %c0_i32_0 : i32, i32, i32
  }
  func.func @transform_1(%arg0: i32) -> (i32, i32) {
    %c0_i32 = arith.constant 0 : i32
    %c0_i32_0 = arith.constant 0 : i32
    %c0_i32_1 = arith.constant 0 : i32
    return %c0_i32, %c0_i32_0 : i32, i32
  }
  func.func @transform_2(%arg0: i32) -> (i32, i32, i32) {
    %c0_i32 = arith.constant 0 : i32
    %c0_i32_0 = arith.constant 0 : i32
    %c0_i32_1 = arith.constant 0 : i32
    return %arg0, %c0_i32, %c0_i32_0 : i32, i32, i32
  }
}

</mosaic_0001>

<bundles_post_ra>
// kernel: encoder_stack_forward.1
= control target key start
LH: loop header
LB: loop body
LE: loop exit
PB: predicated region body
PF: predicated region fallthrough
CT: control target
= control target key end

     0   :  { %7 = vsyncpa [#allocation3], 0  ;;  %s1890_s0 = inlined_call_operand.vmem [shape: f32[2,8,32], index: 0, kind: input, shape index: {}]   ;;  %s1891_s1 = inlined_call_operand.vmem [shape: f32[168,128], index: 1, kind: input, shape index: {}]   ;;  %s1892_s2 = inlined_call_operand.hbm [shape: f32[2,8,32], index: 2, kind: output, shape index: {}]  }
   0x1   :  { %9 = vsyncpa [#allocation3 + $0x1], 0  ;;  %s1638_s9 = smov 0   ;;  %s1640_s10 = smov 0  }
   0x2   :  { %s1642_s11 = smov 0   ;;  %s1644_s12 = smov 0  }
   0x3 LB: > { %s1659_s13 = sadd.s32 4294967295, %s1603_s12   ;;  %s1286_s14 = sadd.s32 4294967294, %s1603_s12   ;;  %s1603_s12 = sphi %s1644_s12, %s1898_s12   ;;  %s1599_s11 = sphi %s1642_s11, %s1897_s11   ;;  %s1595_s10 = sphi %s1640_s10, %s1896_s10   ;;  %s1591_s9 = sphi %s1638_s9, %s1895_s9  }
   0x4   : > { %s1663_s15 = sadd.s32 1, %s1603_s12   ;;  %s69_s16 = sadd.s32 1, %s1599_s11 }
   0x5   : > { %s66_s17 = ssub.s32 %s1603_s12, %s1663_s15  ;;  %p79_p0 = scmp.ne.s32.totalorder %s1599_s11, %s1595_s10 }
   0x6   : > { %p67_p1 = scmp.eq.s32.totalorder %s66_s17, 0  ;;  %p80_p2 = scmp.eq.s32.totalorder %s1659_s13, 1 }
   0x7   : > { %p85_p3 = scmp.ne.s32.totalorder %s1595_s10, %s1591_s9  ;;  %p86_p4 = scmp.eq.s32.totalorder %s1286_s14, 1 }
   0x8   : > { %s1674_s18 = scalar_select %p67_p1, %s1599_s11, %s69_s16  }
   0x9   : > { %p1676_p5 = por %p80_p2, %p79_p0  ;;  %p1680_p6 = por %p86_p4, %p85_p3 }
   0xa   : > { %p1289_p7 = scmp.ge.s32.totalorder %s1603_s12, 1  ;;  %p114_p8 = scmp.lt.s32.totalorder %s1603_s12, 3 }
   0xc   : > { %p115_p9 = pnand %p1289_p7, %p114_p8 }
   0xd   : > { %v140_v0 = vld [vmem:[%s1891_s1] sm:$0xff] (!%p115_p9)  ;;  %v141_v1 = vld [vmem:[%s1891_s1 + $0x8] sm:$0xff] (!%p115_p9)  ;;  %v142_v2 = vld [vmem:[%s1891_s1 + $0x10] sm:$0xff] (!%p115_p9)  ;;  %v1605_v3 = vmov (!%p115_p9), 0.0|0.0   ;;  %vm1606_vm0 = vmmov (!%p115_p9), 0   ;;  %v1607_v6 = vmov (!%p115_p9), 0.0  }
   0xe   : > { %118 = sbr.rel (%p115_p9) target bundleno = 1616 (0x650), region = 28  ;;  %1445 = vmatprep.subr.bf16.mxu1 (!%p115_p9), %v1605_v3  ;;  %v1446_v4 = vpack.c.bf16 (!%p115_p9), %v141_v1, %v140_v0  ;;  %v143_v5 = vld [vmem:[%s1891_s1 + $0x18] sm:$0xff] (!%p115_p9)  ;;  %1361 = vmatprep.mubr.msk.f32.mxu1 (!%p115_p9), %vm1606_vm0, %v1607_v6  ;;  %p135_p10 = scmp.lt.s32.totalorder (!%p115_p9), %s1659_s13, 1  ;;  %vm144_vm1 = vcmask (!%p115_p9), 261120   ;;  %vm221_vm2 = vcmask (!%p115_p9), 64512   ;;  %v966_v57 = vld [vmem:[%s1891_s1 + $0x20] sm:$0xff] (!%p115_p9) }
   0xf   : > { %1374 = vmatprep.subr.mxu0 (!%p115_p9), %v1607_v6  ;;  %1376 = vmatprep.mubr.msk.f32.mxu0 (!%p115_p9), %vm1606_vm0, %v1607_v6  ;;  %v1449_v7 = vpack.c.bf16 (!%p115_p9), %v143_v5, %v142_v2  ;;  %s1608_s6 = smov (!%p115_p9), 80   ;;  %s1609_s7 = smov (!%p115_p9), 96   ;;  %v967_v58 = vld [vmem:[%s1891_s1 + $0x28] sm:$0xff] (!%p115_p9)  ;;  %vm880_vm3 = vcmask (!%p115_p9), 1040384   ;;  %vm882_vm4 = vcmask (!%p115_p9), 1041408   ;;  %vm884_vm5 = vcmask (!%p115_p9), 1042432  }
  0x10   : > { %1447 = vmatpush3.bf16.msra.mxu1 (!%p115_p9), %v1446_v4  ;;  %s1610_s8 = smov (!%p115_p9), 120   ;;  %s1611_s14 = smov (!%p115_p9), 88   ;;  %v1452_v59 = vpack.c.bf16 (!%p115_p9), %v967_v58, %v966_v57  ;;  %vm886_vm6 = vcmask (!%p115_p9), 1043456   ;;  %vm888_vm7 = vcmask (!%p115_p9), 1044480   ;;  %vm890_vm8 = vcmask (!%p115_p9), 1045504   ;;  %v972_v58 = vld [vmem:[%s1891_s1 + $0x50] sm:$0xff] (!%p115_p9) }
  0x11   : > { %1448 = vmatprep.subr.bf16.mxu1 (!%p115_p9), %v1605_v3  ;;  %s1612_s16 = smov (!%p115_p9), 112   ;;  %s1613_s17 = smov (!%p115_p9), 72   ;;  %vm892_vm9 = vcmask (!%p115_p9), 1046528   ;;  %vm962_vm10 = vcmask (!%p115_p9), 130048   ;;  %vm964_vm11 = vcmask (!%p115_p9), 195584   ;;  %vm1138_vm12 = vcmask (!%p115_p9), 523264  }
  0x12   : > { %s1614_s21 = smov (!%p115_p9), 64   ;;  %s1615_s22 = smov (!%p115_p9), 104  }
  0x13   : > { %s1616_s23 = smov (!%p115_p9), 48   ;;  %s1617_s24 = smov (!%p115_p9), 56  }
  0x14   : > { %1450 = vmatpush3.bf16.msra.mxu1 (!%p115_p9), %v1449_v7  ;;  %s1618_s25 = smov (!%p115_p9), 40   ;;  %s1621_s26 = smov (!%p115_p9), 24  }
  0x15   : > { %s136_s29 = scalar_select %p135_p10, %s1659_s13, 1  ;;  %1364 = vmatprep.subr.mxu1 %v1607_v6 }
  0x16   : > { %s1310_s28 = sshll.u32 %s1659_s13, 7  ;;  %s1622_s13 = smov [#allocation2]  }
  0x17   : > { %s1291_s30 = sshll.u32 %s136_s29, 3 }
  0x18   : > { %s138_s5 = scalar_lea.vmem %s1890_s0, %s1291_s30 }
  0x19   : > { %v139_v8 = vld [vmem:[%s138_s5] sm:$0xff]  ;;  %s1847_s5 = scalar_lea.hbm %s1892_s2, %s1310_s28 }
  0x1a   : > { %1362 = vmatmul.mubr.msk.f32.vlgmr.msra.gmra.mrb[0].mxu1 %vm144_vm1, %v139_v8 }
  0x1b   : > { %1366 = vmatprep.mubr.msk.f32.mxu1 %vm1606_vm0, %v1607_v6 }
  0xed   : > { %v214_v9 = vpop.f32.mrb[0].mxu1 }
  0xee   : > { %378 = vrot.lane.b32.xlu1 %v214_v9, %s1608_s6  ;;  %219 = vrot.lane.b32.xlu0 %v214_v9, %s1609_s7  ;;  %v1363_v10 = vpop.f32.mrb[1].mxu1 }
  0xf2   : > { %297 = vrot.lane.b32.xlu1 %v214_v9, %s1610_s8  ;;  %299 = vrot.lane.b32.xlu0 %v214_v9, %s1611_s14  ;;  %s1545_s8 = sshll.u32 %s1622_s13, 4  ;;  %s1546_s8 = int_to_ptr.vmem [resolvable:$false] %s1545_s8 }
  0xf3   : > { %s1547_s14 = scalar_lea.vmem %s1546_s8, 256 }
  0xf6   : > { %376 = vrot.lane.b32.xlu1 %v214_v9, %s1612_s16  ;;  %457 = vrot.lane.b32.xlu0 %v214_v9, %s1613_s17  ;;  %s1619_s16 = smov 16  }
  0xfa   : > { %555 = vrot.lane.b32.xlu1 %v214_v9, %s1614_s21  ;;  %455 = vrot.lane.b32.xlu0 %v214_v9, %s1615_s22 }
  0xfe   : > { %709 = vrot.lane.b32.xlu1 %v214_v9, %s1616_s23  ;;  %632 = vrot.lane.b32.xlu0 %v214_v9, %s1617_s24 }
 0x102   : > { %786 = vrot.lane.b32.xlu0 %v214_v9, %s1618_s25  ;;  %s1620_s25 = smov 8  }
 0x160   : > { %v379_v11 = vpop.permute.xlu1 %378  ;;  %v220_v12 = vpop.permute.xlu0 %219 }
 0x161   : > { %1365 = vmatpush3.xpose.msk.msra.mxu1 %vm221_vm2, %v220_v12  ;;  %1375 = vmatpush3.xpose.msk.msra.mxu0 %vm221_vm2, %v379_v11 }
 0x162   : > { %1369 = vmatprep.subr.mxu1 %v1607_v6  ;;  %1384 = vmatprep.subr.mxu0 %v1607_v6 }
 0x164   : > { %v298_v13 = vpop.permute.xlu1 %297  ;;  %1367 = vmatmul.mubr.msk.f32.vlgmr.msra.gmra.mrb[2].mxu1 %vm221_vm2, %v214_v9  ;;  %v300_v14 = vpop.permute.xlu0 %299 }
 0x165   : > { %1370 = vmatpush3.xpose.msk.msra.mxu1 %vm221_vm2, %v300_v14  ;;  %1371 = vmatprep.mubr.msk.f32.mxu1 %vm1606_vm0, %v1607_v6 }
 0x166   : > { %1379 = vmatprep.subr.mxu1 %v1607_v6 }
 0x168   : > { %v377_v15 = vpop.permute.xlu1 %376  ;;  %1372 = vmatmul.mubr.msk.f32.vlgmr.msra.gmra.mrb[4].mxu1 %vm221_vm2, %v298_v13  ;;  %v458_v16 = vpop.permute.xlu0 %457 }
 0x169   : > { %1377 = vmatmul.mubr.msk.f32.vlgmr.msra.gmra.mrb[0].mxu0 %vm221_vm2, %v377_v15  ;;  %1380 = vmatpush3.xpose.msk.msra.mxu1 %vm221_vm2, %v458_v16 }
 0x16a   : > { %1381 = vmatprep.mubr.msk.f32.mxu1 %vm1606_vm0, %v1607_v6  ;;  %1389 = vmatprep.subr.mxu1 %v1607_v6 }
 0x16b   : > { %1386 = vmatprep.mubr.msk.f32.mxu0 %vm1606_vm0, %v1607_v6 }
 0x16c   : > { %v556_v17 = vpop.permute.xlu1 %555  ;;  %v456_v18 = vpop.permute.xlu0 %455 }
 0x16d   : > { %1382 = vmatmul.mubr.msk.f32.vlgmr.msra.gmra.mrb[6].mxu1 %vm221_vm2, %v456_v18  ;;  %1385 = vmatpush3.msra.mxu0 %v556_v17 }
 0x16e   : > { %1391 = vmatprep.mubr.msk.f32.mxu1 %vm1606_vm0, %v1607_v6  ;;  %1394 = vmatprep.subr.mxu0 %v1607_v6 }
 0x170   : > { %v633_v19 = vpop.permute.xlu0 %632  ;;  %v710_v55 = vpop.permute.xlu1 %709 }
 0x171   : > { %1390 = vmatpush3.msra.mxu1 %v633_v19 }
 0x172   : > { %1399 = vmatprep.subr.mxu1 %v1607_v6 }
 0x174   : > { %v787_v56 = vpop.permute.xlu0 %786 }
 0x237   : > { %v292_v20 = vpop.f32.mrb[2].mxu1 }
 0x238   : > { %v1368_v21 = vpop.f32.mrb[3].mxu1  ;;  %v296_v23 = vmul.f32 0.35355338, %v292_v20 }
 0x23b   : > { %v371_v22 = vpop.f32.mrb[4].mxu1 }
 0x23c   : > { %v375_v24 = vmul.f32 0.35355338, %v371_v22  ;;  %v1373_v25 = vpop.f32.mrb[5].mxu1  ;;  %v450_v26 = vpop.f32.mrb[0].mxu0 }
 0x23d   : > { %v454_v27 = vmul.f32 0.35355338, %v450_v26  ;;  %v1378_v28 = vpop.f32.mrb[1].mxu0 }
 0x23e   : > { %v534_v29 = vmax.f32 %v296_v23, %v375_v24 }
 0x240   : > { %v535_v30 = vmax.f32 %v534_v29, %v454_v27  ;;  %v529_v31 = vpop.f32.mrb[6].mxu1 }
 0x241   : > { %v533_v32 = vmul.f32 0.35355338, %v529_v31  ;;  %v1383_v33 = vpop.f32.mrb[7].mxu1 }
 0x243   : > { %v536_v34 = vmax.f32 %v535_v30, %v533_v32 }
 0x245   : > { %v537_v35 = vsub.f32 %v296_v23, %v536_v34  ;;  %v540_v36 = vsub.f32 %v375_v24, %v536_v34  ;;  %v543_v37 = vsub.f32 %v454_v27, %v536_v34  ;;  %v546_v38 = vsub.f32 %v533_v32, %v536_v34 }
 0x247   : > { %v538_v39 = vmul.f32 1.442695, %v537_v35  ;;  %v541_v40 = vmul.f32 1.442695, %v540_v36  ;;  %v544_v41 = vmul.f32 1.442695, %v543_v37 }
 0x248   : > { %v547_v42 = vmul.f32 1.442695, %v546_v38 }
 0x249   : > { %1531 = vpow2.f32 %v538_v39 }
 0x24a   : > { %1533 = vpow2.f32 %v541_v40 }
 0x24b   : > { %1535 = vpow2.f32 %v544_v41 }
 0x24c   : > { %1537 = vpow2.f32 %v547_v42  ;;  %v968_v42 = vld [vmem:[%s1891_s1 + $0x30] sm:$0xff] }
 0x253   : > { %v1532_v43 = vpop.eup %1531 }
 0x254   : > { %v1534_v44 = vpop.eup %1533 }
 0x255   : > { %v549_v45 = vadd.f32 %v1534_v44, %v1532_v43  ;;  %v1536_v46 = vpop.eup %1535 }
 0x256   : > { %v1538_v48 = vpop.eup %1537 }
 0x257   : > { %v550_v47 = vadd.f32 %v1536_v46, %v549_v45 }
 0x259   : > { %v551_v49 = vadd.f32 %v1538_v48, %v550_v47  ;;  %v969_v47 = vld [vmem:[%s1891_s1 + $0x38] sm:$0xff] }
 0x25b   : > { %1539 = vrcp.f32 %v551_v49  ;;  %v971_v49 = vld [vmem:[%s1891_s1 + $0x48] sm:$0xff] }
 0x265   : > { %v1540_v50 = vpop.eup %1539 }
 0x266   : > { %v554_v51 = vmul.f32 %v1540_v50, %v1532_v43  ;;  %v631_v52 = vmul.f32 %v1540_v50, %v1534_v44  ;;  %v708_v53 = vmul.f32 %v1540_v50, %v1536_v46  ;;  %v785_v54 = vmul.f32 %v1540_v50, %v1538_v48  ;;  %v970_v48 = vld [vmem:[%s1891_s1 + $0x40] sm:$0xff] }
 0x268   : > { %1387 = vmatmul.mubr.msk.f32.vlgmr.msra.gmra.mrb[2].mxu0 %vm221_vm2, %v554_v51  ;;  %1392 = vmatmul.mubr.msk.f32.vlgmr.msra.gmra.mrb[8].mxu1 %vm221_vm2, %v631_v52 }
 0x269   : > { %1395 = vmatpush3.msra.mxu0 %v710_v55  ;;  %1400 = vmatpush3.msra.mxu1 %v787_v56 }
 0x26a   : > { %1396 = vmatprep.mubr.msk.f32.mxu0 %vm1606_vm0, %v1607_v6  ;;  %1401 = vmatprep.mubr.msk.f32.mxu1 %vm1606_vm0, %v1607_v6 }
 0x26b   : > { %1451 = vmatprep.subr.bf16.mxu0 %v1605_v3  ;;  %1457 = vmatprep.subr.bf16.mxu1 %v1605_v3 }
 0x26c   : > { %1397 = vmatmul.mubr.msk.f32.vlgmr.msra.gmra.mrb[4].mxu0 %vm221_vm2, %v708_v53  ;;  %1402 = vmatmul.mubr.msk.f32.vlgmr.msra.gmra.mrb[10].mxu1 %vm221_vm2, %v785_v54 }
 0x26d   : > { %1412 = vmatprep.mubr.msk.f32.mxu0 %vm1606_vm0, %v1607_v6  ;;  %1423 = vmatprep.mubr.msk.f32.mxu1 %vm1606_vm0, %v1607_v6 }
 0x26e   : > { %1453 = vmatpush3.bf16.msra.mxu0 %v1452_v59  ;;  %v973_v59 = vld [vmem:[%s1891_s1 + $0x58] sm:$0xff] }
 0x26f   : > { %1454 = vmatprep.subr.bf16.mxu0 %v1605_v3 }
 0x33b   : > { %v627_v60 = vpop.f32.mrb[2].mxu0  ;;  %v704_v61 = vpop.f32.mrb[8].mxu1 }
 0x33c   : > { %v863_v62 = vrot.slane %v627_v60, 3  ;;  %v894_v63 = vrot.slane %v627_v60, 1  ;;  %v896_v0 = vrot.slane %v627_v60, 4  ;;  %v915_v1 = vrot.slane %v627_v60, 2  ;;  %v1388_v2 = vpop.f32.mrb[3].mxu0  ;;  %v1393_v4 = vpop.f32.mrb[9].mxu1 }
 0x33d   : > { %v917_v5 = vrot.slane %v627_v60, 5  ;;  %v936_v7 = vrot.slane %v627_v60, 6  ;;  %v866_v8 = vrot.slane %v704_v61, 6  ;;  %v868_v9 = vrot.slane %v704_v61, 1 }
 0x33e   : > { %v881_v10 = vsel %vm880_vm3, %v627_v60, %v863_v62  ;;  %v898_v11 = vrot.slane %v704_v61, 7  ;;  %v919_v12 = vrot.slane %v704_v61, 3  ;;  %v900_v13 = vrot.slane %v704_v61, 2 }
 0x33f   : > { %v781_v14 = vpop.f32.mrb[4].mxu0  ;;  %v858_v15 = vpop.f32.mrb[10].mxu1  ;;  %v929_v16 = vsel %vm880_vm3, %v915_v1, %v917_v5  ;;  %v908_v17 = vsel %vm880_vm3, %v894_v63, %v896_v0  ;;  %v938_v18 = vrot.slane %v704_v61, 4  ;;  %v942_v19 = vsel %vm880_vm3, %v863_v62, %v936_v7 }
 0x340   : > { %v1398_v20 = vpop.f32.mrb[5].mxu0  ;;  %v1403_v21 = vpop.f32.mrb[11].mxu1  ;;  %v921_v22 = vrot.slane %v781_v14, 6  ;;  %v923_v23 = vrot.slane %v781_v14, 1  ;;  %v925_v24 = vrot.slane %v858_v15, 4  ;;  %v927_v25 = vrot.slane %v858_v15, 7 }
 0x341   : > { %v930_v26 = vsel %vm882_vm4, %v929_v16, %v704_v61  ;;  %v902_v27 = vrot.slane %v781_v14, 5  ;;  %v904_v28 = vrot.slane %v858_v15, 3  ;;  %v906_v29 = vrot.slane %v858_v15, 6 }
 0x342   : > { %v931_v30 = vsel %vm884_vm5, %v930_v26, %v919_v12  ;;  %v909_v31 = vsel %vm882_vm4, %v908_v17, %v898_v11  ;;  %v873_v32 = vrot.slane %v781_v14, 7  ;;  %v878_v33 = vrot.slane %v858_v15, 5  ;;  %v974_v11 = vld [vmem:[%s1891_s1 + $0x60] sm:$0xff]  ;;  %v975_v12 = vld [vmem:[%s1891_s1 + $0x68] sm:$0xff] }
 0x343   : > { %v932_v34 = vsel %vm886_vm6, %v931_v30, %v921_v22  ;;  %v910_v35 = vsel %vm884_vm5, %v909_v31, %v900_v13  ;;  %v940_v36 = vrot.slane %v781_v14, 2  ;;  %v943_v37 = vsel %vm882_vm4, %v942_v19, %v868_v9  ;;  %v976_v13 = vld [vmem:[%s1891_s1 + $0x70] sm:$0xff]  ;;  %v978_v17 = vld [vmem:[%s1891_s1 + $0x80] sm:$0xff] }
 0x344   : > { %v933_v38 = vsel %vm888_vm7, %v932_v34, %v923_v23  ;;  %v911_v39 = vsel %vm886_vm6, %v910_v35, %v902_v27  ;;  %v944_v40 = vsel %vm884_vm5, %v943_v37, %v938_v18  ;;  %v871_v41 = vrot.slane %v781_v14, 4  ;;  %v979_v18 = vld [vmem:[%s1891_s1 + $0x88] sm:$0xff]  ;;  %v980_v22 = vld [vmem:[%s1891_s1 + $0x90] sm:$0xff]  ;;  %v981_v23 = vld [vmem:[%s1891_s1 + $0x98] sm:$0xff] }
 0x345   : > { %v934_v43 = vsel %vm890_vm8, %v933_v38, %v925_v24  ;;  %v912_v44 = vsel %vm888_vm7, %v911_v39, %v781_v14  ;;  %v945_v45 = vsel %vm886_vm6, %v944_v40, %v873_v32  ;;  %v883_v46 = vsel %vm882_vm4, %v881_v10, %v866_v8 }
 0x346   : > { %v935_v50 = vsel %vm892_vm9, %v934_v43, %v927_v25  ;;  %v913_v51 = vsel %vm890_vm8, %v912_v44, %v904_v28  ;;  %v946_v52 = vsel %vm888_vm7, %v945_v45, %v940_v36  ;;  %v885_v53 = vsel %vm884_vm5, %v883_v46, %v868_v9 }
 0x347   : > { %954 = vrot.lane.b32.xlu0 %v935_v50, %s1619_s16  ;;  %v914_v54 = vsel %vm892_vm9, %v913_v51, %v906_v29  ;;  %v947_v55 = vsel %vm890_vm8, %v946_v52, %v878_v33  ;;  %v887_v56 = vsel %vm886_vm6, %v885_v53, %v871_v41  ;;  %v876_v57 = vrot.slane %v858_v15, 2 }
 0x348   : > { %950 = vrot.lane.b32.xlu1 %v914_v54, %s1620_s25  ;;  %v948_v60 = vsel %vm892_vm9, %v947_v55, %v858_v15  ;;  %v889_v61 = vsel %vm888_vm7, %v887_v56, %v873_v32  ;;  %v1455_v62 = vpack.c.bf16 %v969_v47, %v968_v42  ;;  %v1458_v63 = vpack.c.bf16 %v971_v49, %v970_v48  ;;  %v977_v15 = vld [vmem:[%s1891_s1 + $0x78] sm:$0xff] }
 0x349   : > { %v891_v0 = vsel %vm890_vm8, %v889_v61, %v876_v57  ;;  %v1461_v2 = vpack.c.bf16 %v973_v59, %v972_v58  ;;  %v1464_v14 = vpack.c.bf16 %v975_v12, %v974_v11  ;;  %v1467_v16 = vpack.c.bf16 %v977_v15, %v976_v13 }
 0x34a   : > { %v893_v1 = vsel %vm892_vm9, %v891_v0, %v878_v33  ;;  %1456 = vmatpush3.bf16.msra.mxu0 %v1455_v62  ;;  %1459 = vmatpush3.bf16.msra.mxu1 %v1458_v63  ;;  %v1470_v19 = vpack.c.bf16 %v979_v18, %v978_v17  ;;  %v1473_v24 = vpack.c.bf16 %v981_v23, %v980_v22 }
 0x34b   : > { %1460 = vmatprep.subr.bf16.mxu1 %v1605_v3  ;;  %1463 = vmatprep.subr.bf16.mxu0 %v1605_v3 }
 0x34c   : > { %958 = vrot.lane.b32.xlu1 %v948_v60, %s1621_s26  ;;  %s132_s26 = sand.u32 1, %s1595_s10  }
 0x34d   : > { %s1290_s27 = sshll.u32 %s132_s26, 3  ;;  %s1214_s6 = scalar_lea.sflag [#allocation3], %s132_s26 }
 0x34e   : > { %1462 = vmatpush3.bf16.msra.mxu1 %v1461_v2  ;;  %s134_s29 = scalar_lea.vmem [#allocation2], %s1290_s27 }
 0x34f   : > { %s1227_s30 = sshll.u32 %s134_s29, 4  ;;  %s1849_s30 = int_to_ptr.vmem [resolvable:$true] %s1227_s30 }
 0x350   : > { %s1541_s7 = scalar_lea.vmem %s1849_s30, 128  ;;  %p1548_p0 = scmp.lt.s32.totalorder %s1849_s30, %s1546_s8 }
 0x351   : > { %p1542_p11 = scmp.ne.s32.totalorder %s1849_s30, %s1541_s7  ;;  %p1549_p1 = scmp.lt.s32.totalorder %s1547_s14, %s1541_s7 }
 0x353   : > { %p1543_p12 = pnand %p1542_p11, %p1676_p5  ;;  %p1550_p2 = por %p1549_p1, %p1548_p0 }
 0x355   : > { %p1544_p13 = pneg %p1543_p12 }
 0x357   : > { %p1551_p3 = pnand %p1550_p2, %p1544_p13 }
 0x3b9   : > { %v955_v5 = vpop.permute.xlu0 %954 }
 0x3ba   : > { %v951_v4 = vpop.permute.xlu1 %950 }
 0x3bb   : > { %v961_v7 = vsel %vm221_vm2, %v893_v1, %v951_v4 }
 0x3bc   : > { %v963_v9 = vsel %vm962_vm10, %v961_v7, %v955_v5 }
 0x3be   : > { %v959_v8 = vpop.permute.xlu1 %958 }
 0x3bf   : > { %v965_v10 = vsel %vm964_vm11, %v963_v9, %v959_v8 }
 0x3c0   : > { %1413 = vmatmul.mubr.msk.f32.vlgmr.msra.gmra.mrb[6].mxu0 %vm144_vm1, %v965_v10 }
 0x3c1   : > { %1442 = vmatprep.mubr.msk.f32.mxu0 %vm1606_vm0, %v1607_v6  ;;  %v1306_v6 = vld [vmem:[%s1891_s1 + $0xa0] ss:$0 sm:$0xff]  ;;  %1465 = vmatpush3.bf16.msra.mxu0 %v1464_v14 }
 0x3c2   : > { %1135 = vrot.lane.b32.xlu0 %v1306_v6, %s1614_s21  ;;  %1466 = vmatprep.subr.bf16.mxu0 %v1605_v3 }
 0x3c5   : > { %1468 = vmatpush3.bf16.msra.mxu0 %v1467_v16 }
 0x3c6   : > { %1469 = vmatprep.subr.bf16.mxu0 %v1605_v3 }
 0x3c9   : > { %1471 = vmatpush3.bf16.msra.mxu0 %v1470_v19 }
 0x3ca   : > { %1472 = vmatprep.subr.bf16.mxu0 %v1605_v3 }
 0x3cd   : > { %1474 = vmatpush3.bf16.msra.mxu0 %v1473_v24 }
 0x434   : > { %v1136_v28 = vpop.permute.xlu0 %1135 }
 0x493   : > { %v1052_v20 = vpop.f32.mrb[6].mxu0 }
 0x494   : > { %v1414_v21 = vpop.f32.mrb[7].mxu0  ;;  %1424 = vmatmul.mubr.msk.f32.vlgmr.msra.gmra.mrb[12].mxu1 %vm144_vm1, %v1052_v20 }
 0x567   : > { %v1129_v25 = vpop.f32.mrb[12].mxu1 }
 0x568   : > { %v1130_v26 = vadd.f32 %v1306_v6, %v1129_v25  ;;  %v1425_v27 = vpop.f32.mrb[13].mxu1 }
 0x56a   : > { %v1133_v3 = vmax.f32 %v1130_v26, 0.0 }
 0x56c   : > { %1443 = vmatmul.mubr.msk.f32.vlgmr.msra.gmra.mrb[8].mxu0 %vm1138_vm12, %v1133_v3 }
 0x63f   : > { %v1208_v29 = vpop.f32.mrb[8].mxu0 }
 0x640   : > { %v1209_v30 = vadd.f32 %v1208_v29, %v1136_v28  ;;  %v1444_v31 = vpop.f32.mrb[9].mxu0 }
 0x642   : > { %1212 = vst.msk [vmem:[%s134_s29] sm:$0xff] %vm144_vm1, %v1209_v30 }
 0x643   : > { %1554 = shalt.err (!%p1551_p3)
}
 0x644   : > { %s1555_s16 = scalar_lea.hbm %s1847_s5, 128  ;;  %s1559_s21 = scalar_lea.hbm %s1892_s2, 256 }
 0x645   : > { %p1556_p4 = scmp.ne.s32.totalorder %s1847_s5, %s1555_s16  ;;  %p1560_p9 = scmp.lt.u32.totalorder %s1847_s5, %s1892_s2 }
 0x646   : > { %p1561_p10 = scmp.lt.u32.totalorder %s1559_s21, %s1555_s16  ;;  %p1563_p12 = scmp.lt.u32.totalorder %s1555_s16, %s1847_s5 }
 0x647   : > { %p1557_p7 = pnand %p1556_p4, %p1676_p5 }
 0x648   : > { %p1562_p11 = por %p1561_p10, %p1560_p9 }
 0x649   : > { %p1558_p8 = pneg %p1557_p7 }
 0x64a   : > { %p1564_p13 = por %p1563_p12, %p1562_p11 }
 0x64c   : > { %p1565_p0 = pnand %p1564_p13, %p1558_p8 }
 0x64e   : > { %1568 = shalt.err (!%p1565_p0)
}
 0x64f   : > { %1475 = dma.vmem_to_hbm [thread:$0]  (%p1676_p5), %s1849_s30, 128, %s1847_s5, %s1214_s6  }
 0x650 PF: > { %p1481_p1 = scmp.ge.s32.totalorder %s1603_s12, 2  ;;  %s1239_s25 = sand.u32 1, %s1591_s9  }
 0x651   : > { %s1240_s26 = scalar_lea.sflag [#allocation3], %s1239_s25 }
 0x652   : > { %p1478_p2 = pnand %p1481_p1, %p1680_p6 }
 0x654   : > { %1586 = dma.done.wait (!%p1478_p2), %s1240_s26, 128  }
 0x655   : > { %1588 = vsyncadd (!%p1478_p2), %s1240_s26, 4294967168  ;;  %p12_p3 = scmp.ge.s32.totalorder %s1663_s15, 4   ;;  %s1895_s9 = smov %s1595_s10 }
 0x656   : > { %s1896_s10 = smov %s1599_s11  ;;  %s1897_s11 = smov %s1674_s18 }
 0x657   : > { %s1898_s12 = smov %s1663_s15  ;;  %14 = sbr.rel (!%p12_p3) target bundleno = 3 (0x3), region = 63 }
 0x65e   :  { %1245 = vsyncpa [#allocation3], 1 }
 0x65f   :  { %1247 = vsyncpa [#allocation3 + $0x1], 1 }

</bundles_post_ra>
